<compile_context>
chip_gen: v7x
topology: tpu7x:2x2x1
jax: 0.10.0
libtpu: 0.0.40
codegen_flags: <defaults>
</compile_context>

<pallas_src>
import functools
from typing import NamedTuple

import jax
import jax.numpy as jnp
import numpy as np
from jax.experimental import pallas as pl
from jax.experimental.pallas import tpu as pltpu

_MIB = 1024 * 1024


def _round_up(x: int, m: int) -> int:
    return ((x + m - 1) // m) * m


# --------------------------------------------------------------------------- planning


def _tpu_info():
    """(vmem_capacity_bytes, tensorcores_per_chip, device_kind) with safe fallbacks."""
    kind = ""
    try:
        kind = jax.devices()[0].device_kind.lower()
    except Exception:
        pass
    vmem = None
    try:
        vmem = int(pltpu.get_tpu_info().vmem_capacity_bytes)
    except Exception:
        vmem = None
    is_v7 = "v7" in kind
    if not vmem or vmem <= 0:
        vmem = 64 * _MIB if is_v7 else 128 * _MIB
    num_cores = 2 if is_v7 else 1
    return vmem, num_cores, kind


def _vmem_est(D, th, tm, w_itemsize, out_itemsize, weight_buffers):
    """Conservative VMEM footprint for one pipeline configuration."""
    w = weight_buffers * (D * 2 * th + th * D) * w_itemsize       # w13 + w2 blocks
    b = weight_buffers * (2 * th + D) * 4                         # f32 bias blocks
    xo = 2 * tm * D * w_itemsize + 2 * tm * D * out_itemsize      # x / out double buffers
    acc = tm * D * 4                                              # f32 accumulator scratch
    inter = tm * th * (8 + 4 + w_itemsize)                        # h13 f32, h f32, h bf16
    return w + b + xo + acc + inter


def _pick_th(D, H, tm, w_itemsize, out_itemsize, budget, resident_buffers):
    """Largest th (=H, or a 128-multiple divisor of H) whose VMEM estimate fits budget.

    Returns (th, fits). Streamed tiles are always 128-multiples (lane-aligned split).
    """
    if _vmem_est(D, H, tm, w_itemsize, out_itemsize, resident_buffers) <= budget:
        return H, True
    cands = sorted((c for c in range(128, H, 128) if H % c == 0), reverse=True)
    for th in cands:
        if _vmem_est(D, th, tm, w_itemsize, out_itemsize, 2) <= budget:
            return th, True
    return (cands[-1] if cands else H), False


class SwiGLUPlan(NamedTuple):
    tm: int
    th: int
    nh: int
    vmem_limit_bytes: int
    num_cores: int
    single_buffer_weights: bool


def plan_swiglu_ffn(D, H, *, compute_dtype=jnp.bfloat16, out_itemsize=4):
    vmem_cap, num_cores, kind = _tpu_info()
    # ~80% of physical VMEM: ~102 MiB on v5e/v6e (128 MiB), ~51 MiB on v7x (64 MiB);
    # always leave >= 12 MiB headroom for Mosaic internals.
    vmem_limit = max(32 * _MIB, min(int(vmem_cap * 0.8), vmem_cap - 12 * _MIB))
    budget = vmem_limit - 2 * _MIB
    w_itemsize = jnp.dtype(compute_dtype).itemsize

    # Pass 1: can the weights live fully resident (single-buffered) at a modest tile?
    tm = 256
    th, fits = _pick_th(D, H, tm, w_itemsize, out_itemsize, budget, resident_buffers=1)
    if th < H or not fits:
        # Weights must be streamed -> raise the token tile so the kernel is MXU-bound
        # (arithmetic intensity ~ tm FLOP per weight byte). v5e is already at its knee.
        if "v7" in kind:
            tm = 448
        elif "v5" in kind:
            tm = 256
        else:                       # v6e / unknown
            tm = 640
        th, fits = _pick_th(D, H, tm, w_itemsize, out_itemsize, budget, resident_buffers=1)
        while not fits and tm > 64:
            tm = max(64, _round_up(tm // 2, 8))
            th, fits = _pick_th(D, H, tm, w_itemsize, out_itemsize, budget,
                                resident_buffers=1)

    nh = max(1, H // th)
    return SwiGLUPlan(tm=tm, th=th, nh=nh, vmem_limit_bytes=vmem_limit,
                      num_cores=num_cores, single_buffer_weights=(nh == 1))


# --------------------------------------------------------------------------- packing


class PackedSwiGLU(NamedTuple):
    w13: jax.Array
    b13: jax.Array
    w2: jax.Array
    b2: jax.Array
    plan: SwiGLUPlan


def pack_swiglu_ffn(w1, b1, w3, b3, w2, b2, *, compute_dtype=jnp.bfloat16, plan=None):
    """One-time weight repack (do at module init, NOT per forward call).

    Interleaves fc1/fc3 per hidden tile: block j holds [w1_tile_j | w3_tile_j], so the
    kernel does a single MXU pass per step. Casts weights to the MXU compute dtype.
    """
    D, H = w1.shape
    if plan is None:
        plan = plan_swiglu_ffn(D, H, compute_dtype=compute_dtype)
    nh, th = plan.nh, plan.th
    w13 = jnp.stack([w1.reshape(D, nh, th), w3.reshape(D, nh, th)], axis=2)
    w13 = w13.reshape(D, 2 * H).astype(compute_dtype)
    b13 = jnp.stack([b1.reshape(nh, th), b3.reshape(nh, th)], axis=1)
    b13 = b13.reshape(1, 2 * H).astype(jnp.float32)
    w2c = w2.astype(compute_dtype)
    b2r = b2.reshape(1, -1).astype(jnp.float32)
    return PackedSwiGLU(w13=w13, b13=b13, w2=w2c, b2=b2r, plan=plan)


# --------------------------------------------------------------------------- kernels


def _swiglu_kernel_resident(x_ref, w13_ref, b13_ref, w2_ref, b2_ref, o_ref):
    # Whole hidden dim resident: single pass, no accumulator round-trip.
    h13 = jnp.dot(x_ref[...], w13_ref[...], preferred_element_type=jnp.float32)
    h13 = h13 + b13_ref[...]
    th = w13_ref.shape[1] // 2
    h1 = h13[:, :th]
    h3 = h13[:, th:]
    h = (h1 * jax.nn.sigmoid(h1)) * h3                       # SiLU(fc1) * fc3, f32
    o_ref[...] = (jnp.dot(h.astype(w2_ref.dtype), w2_ref[...],
                          preferred_element_type=jnp.float32)
                  + b2_ref[...]).astype(o_ref.dtype)


def _swiglu_kernel_tiled(x_ref, w13_ref, b13_ref, w2_ref, b2_ref, o_ref, acc_ref):
    # Hidden dim tiled as the innermost (reduction) grid axis.
    j = pl.program_id(1)

    @pl.when(j == 0)
    def _():
        acc_ref[...] = jnp.zeros_like(acc_ref)

    h13 = jnp.dot(x_ref[...], w13_ref[...], preferred_element_type=jnp.float32)
    h13 = h13 + b13_ref[...]
    th = w13_ref.shape[1] // 2
    h1 = h13[:, :th]
    h3 = h13[:, th:]
    h = (h1 * jax.nn.sigmoid(h1)) * h3
    acc_ref[...] += jnp.dot(h.astype(w2_ref.dtype), w2_ref[...],
                            preferred_element_type=jnp.float32)

    @pl.when(j == pl.num_programs(1) - 1)
    def _():
        o_ref[...] = (acc_ref[...] + b2_ref[...]).astype(o_ref.dtype)


# --------------------------------------------------------------------------- forward


@functools.partial(
    jax.jit,
    static_argnames=("th", "tm", "vmem_limit_bytes", "num_cores", "single_buffer_weights"))
def _swiglu_forward(x, w13, b13, w2, b2, *, th, tm, vmem_limit_bytes, num_cores,
                    single_buffer_weights):
    orig_shape, orig_dtype = x.shape, x.dtype
    D = orig_shape[-1]
    H = w13.shape[1] // 2
    nh = H // th
    compute_dtype = w13.dtype

    x2d = x.reshape(-1, D)
    M = x2d.shape[0]

    # Token tile: clamp to (padded) token count; on multi-core chips keep >= num_cores
    # token tiles so the "parallel" axis actually feeds every TensorCore.
    M8 = _round_up(max(M, 1), 8)
    tm_eff = min(_round_up(tm, 8), M8)
    while num_cores > 1 and tm_eff > 8 and -(-M8 // tm_eff) < num_cores:
        tm_eff = max(8, _round_up(tm_eff // 2, 8))
    M_pad = _round_up(M, tm_eff)
    if M_pad != M:
        x2d = jnp.pad(x2d, ((0, M_pad - M), (0, 0)))
    x2d = x2d.astype(compute_dtype)

    n_tok = M_pad // tm_eff
    w_itemsize = jnp.dtype(compute_dtype).itemsize

    # Honest HBM cost: weights re-stream once per token tile when the hidden dim is tiled.
    weight_passes = n_tok if nh > 1 else 1
    flops = 6 * M_pad * D * H                                   # 2*M*D*2H + 2*M*H*D
    transcendentals = M_pad * H                                 # sigmoid
    bytes_accessed = (M_pad * D * w_itemsize
                      + weight_passes * 3 * D * H * w_itemsize
                      + weight_passes * (2 * H + D) * 4
                      + M_pad * D * jnp.dtype(orig_dtype).itemsize)

    weight_pipe = {}
    if single_buffer_weights and nh == 1:
        # Constant block index -> weights DMA'd once; the second buffer is pure VMEM waste.
        weight_pipe = dict(pipeline_mode=pl.Buffered(1))

    in_specs = [
        pl.BlockSpec((tm_eff, D), lambda i, j: (i, 0)),                 # x tile
        pl.BlockSpec((D, 2 * th), lambda i, j: (0, j), **weight_pipe),  # [w1|w3] tile
        pl.BlockSpec((1, 2 * th), lambda i, j: (0, j), **weight_pipe),  # [b1|b3] tile
        pl.BlockSpec((th, D), lambda i, j: (j, 0), **weight_pipe),      # w2 tile
        pl.BlockSpec((1, D), lambda i, j: (0, 0), **weight_pipe),       # b2
    ]
    out_spec = pl.BlockSpec((tm_eff, D), lambda i, j: (i, 0))

    if nh == 1:
        kernel = _swiglu_kernel_resident
        scratch = []
    else:
        kernel = _swiglu_kernel_tiled
        scratch = [pltpu.VMEM((tm_eff, D), jnp.float32)]

    out = pl.pallas_call(
        kernel,
        out_shape=jax.ShapeDtypeStruct((M_pad, D), orig_dtype),
        grid=(n_tok, nh),
        in_specs=in_specs,
        out_specs=out_spec,
        scratch_shapes=scratch,
        compiler_params=pltpu.CompilerParams(
            dimension_semantics=("parallel", "arbitrary"),
            vmem_limit_bytes=vmem_limit_bytes,
        ),
        cost_estimate=pl.CostEstimate(
            flops=flops, transcendentals=transcendentals,
            bytes_accessed=bytes_accessed),
    )(x2d, w13, b13, w2, b2)

    if M_pad != M:
        out = out[:M]
    return out.reshape(orig_shape)


def swiglu_ffn(x, packed: PackedSwiGLU):
    """Forward pass of SwiGLUFFN on pre-packed weights. x: (..., D) -> (..., D)."""
    p = packed.plan
    kwargs = dict(th=p.th, tm=p.tm, vmem_limit_bytes=p.vmem_limit_bytes,
                  num_cores=p.num_cores)
    if p.single_buffer_weights:
        try:
            return _swiglu_forward(x, packed.w13, packed.b13, packed.w2, packed.b2,
                                   single_buffer_weights=True, **kwargs)
        except Exception:
            # pl.Buffered(1) rejected on this JAX/Mosaic build -> plain double-buffering.
            pass
    return _swiglu_forward(x, packed.w13, packed.b13, packed.w2, packed.b2,
                           single_buffer_weights=False, **kwargs)


# --------------------------------------------------------------------------- reference


def reference_swiglu(x, w1, b1, w3, b3, w2, b2):
    h1 = x @ w1 + b1
    h3 = x @ w3 + b3
    h = jax.nn.silu(h1) * h3
    return h @ w2 + b2


if __name__ == "__main__":
    key = jax.random.PRNGKey(0)
    B, N, D, H = 2, 8, 32, 64  # batch, seq, in_features, hidden_features

    k_x, k1, kb1, k3, kb3, k2, kb2 = jax.random.split(key, 7)
    # Deterministic init mimicking nn.Linear's U(-1/sqrt(fan_in), 1/sqrt(fan_in)).
    lim_d = 1.0 / np.sqrt(D)
    lim_h = 1.0 / np.sqrt(H)
    x = jax.random.normal(k_x, (B, N, D), dtype=jnp.float32)
    w1 = jax.random.uniform(k1, (D, H), jnp.float32, -lim_d, lim_d)   # fc1.weight.T
    b1 = jax.random.uniform(kb1, (H,), jnp.float32, -lim_d, lim_d)
    w3 = jax.random.uniform(k3, (D, H), jnp.float32, -lim_d, lim_d)   # fc3.weight.T
    b3 = jax.random.uniform(kb3, (H,), jnp.float32, -lim_d, lim_d)
    w2 = jax.random.uniform(k2, (H, D), jnp.float32, -lim_h, lim_h)   # fc2.weight.T
    b2 = jax.random.uniform(kb2, (D,), jnp.float32, -lim_h, lim_h)

    # One-time packing (off the per-call hot path), then the fused forward.
    packed = pack_swiglu_ffn(w1, b1, w3, b3, w2, b2)
    out = swiglu_ffn(x, packed)
    out = jax.block_until_ready(out)
    assert out.shape == (B, N, D)

    # Reference in f32 with inputs rounded to bf16 (kernel's MXU compute dtype).
    def r16(a):
        return a.astype(jnp.bfloat16).astype(jnp.float32)

    ref = reference_swiglu(r16(x), r16(w1), b1, r16(w3), b3, r16(w2), b2)
    np.testing.assert_allclose(np.asarray(out), np.asarray(ref), rtol=2e-2, atol=2e-2)

    print("KERNEL_OK")
</pallas_src>

<mosaic_0001>
module attributes {stable_mosaic.version = 11 : i64} {
  func.func @_swiglu_kernel_resident(%arg0: i32, %arg1: i32, %arg2: memref<16x32xbf16, #tpu.memory_space<vmem>>, %arg3: memref<32x128xbf16, #tpu.memory_space<vmem>>, %arg4: memref<1x128xf32, #tpu.memory_space<vmem>>, %arg5: memref<64x32xbf16, #tpu.memory_space<vmem>>, %arg6: memref<1x32xf32, #tpu.memory_space<vmem>>, %arg7: memref<16x32xf32, #tpu.memory_space<vmem>>) attributes {dimension_semantics = [#tpu.dimension_semantics<parallel>, #tpu.dimension_semantics<arbitrary>], iteration_bounds = array<i64: 1, 1>, scalar_prefetch = 0 : i64, scratch_operands = 0 : i64, tpu.core_type = #tpu.core_type<tc>, window_params = [{transform_indices = @transform_0, window_bounds = array<i64: 16, 32>}, {pipeline_mode = #tpu.pipeline_mode<synchronous>, transform_indices = @transform_1, window_bounds = array<i64: 32, 128>}, {pipeline_mode = #tpu.pipeline_mode<synchronous>, transform_indices = @transform_2, window_bounds = array<i64: 1, 128>}, {pipeline_mode = #tpu.pipeline_mode<synchronous>, transform_indices = @transform_3, window_bounds = array<i64: 64, 32>}, {pipeline_mode = #tpu.pipeline_mode<synchronous>, transform_indices = @transform_4, window_bounds = array<i64: 1, 32>}, {transform_indices = @transform_5, window_bounds = array<i64: 16, 32>}]} {
    %c0 = arith.constant 0 : index
    %c0_0 = arith.constant 0 : index
    %0 = vector.load %arg2[%c0, %c0_0] : memref<16x32xbf16, #tpu.memory_space<vmem>>, vector<16x32xbf16>
    %c0_1 = arith.constant 0 : index
    %c0_2 = arith.constant 0 : index
    %1 = vector.load %arg3[%c0_1, %c0_2] : memref<32x128xbf16, #tpu.memory_space<vmem>>, vector<32x128xbf16>
    %cst = arith.constant dense<0.000000e+00> : vector<16x128xf32>
    %2 = tpu.matmul %0, %1, %cst {dimension_numbers = #tpu.dot_dimension_numbers<[1], [0], [0], [1], [0, 0, 1, 1], [], []>} : vector<16x32xbf16>, vector<32x128xbf16>, vector<16x128xf32> -> vector<16x128xf32>
    %c0_3 = arith.constant 0 : index
    %c0_4 = arith.constant 0 : index
    %3 = vector.load %arg4[%c0_3, %c0_4] : memref<1x128xf32, #tpu.memory_space<vmem>>, vector<1x128xf32>
    %4 = vector.broadcast %3 : vector<1x128xf32> to vector<16x128xf32>
    %5 = arith.addf %2, %4 : vector<16x128xf32>
    %6 = vector.extract_strided_slice %5 {offsets = [0, 0], sizes = [16, 64], strides = [1, 1]} : vector<16x128xf32> to vector<16x64xf32>
    %7 = vector.extract_strided_slice %5 {offsets = [0, 64], sizes = [16, 64], strides = [1, 1]} : vector<16x128xf32> to vector<16x64xf32>
    %8 = arith.negf %6 : vector<16x64xf32>
    %9 = math.exp %8 : vector<16x64xf32>
    %cst_5 = arith.constant 1.000000e+00 : f32
    %10 = vector.broadcast %cst_5 : f32 to vector<16x64xf32>
    %11 = arith.addf %10, %9 : vector<16x64xf32>
    %12 = arith.divf %10, %11 : vector<16x64xf32>
    %13 = arith.mulf %6, %12 : vector<16x64xf32>
    %14 = arith.mulf %13, %7 : vector<16x64xf32>
    %15 = arith.truncf %14 : vector<16x64xf32> to vector<16x64xbf16>
    %c0_6 = arith.constant 0 : index
    %c0_7 = arith.constant 0 : index
    %16 = vector.load %arg5[%c0_6, %c0_7] : memref<64x32xbf16, #tpu.memory_space<vmem>>, vector<64x32xbf16>
    %cst_8 = arith.constant dense<0.000000e+00> : vector<16x32xf32>
    %17 = tpu.matmul %15, %16, %cst_8 {dimension_numbers = #tpu.dot_dimension_numbers<[1], [0], [0], [1], [0, 0, 1, 1], [], []>} : vector<16x64xbf16>, vector<64x32xbf16>, vector<16x32xf32> -> vector<16x32xf32>
    %c0_9 = arith.constant 0 : index
    %c0_10 = arith.constant 0 : index
    %18 = vector.load %arg6[%c0_9, %c0_10] : memref<1x32xf32, #tpu.memory_space<vmem>>, vector<1x32xf32>
    %19 = vector.broadcast %18 : vector<1x32xf32> to vector<16x32xf32>
    %20 = arith.addf %17, %19 : vector<16x32xf32>
    %c0_11 = arith.constant 0 : index
    %c0_12 = arith.constant 0 : index
    %21 = vector.load %arg7[%c0_11, %c0_12] : memref<16x32xf32, #tpu.memory_space<vmem>>, vector<16x32xf32>
    tpu.vector_store %arg7[%c0_11, %c0_12], %20 {strides = array<i32>} : memref<16x32xf32, #tpu.memory_space<vmem>>, vector<16x32xf32>,
    return
  }
  func.func @transform_0(%arg0: i32, %arg1: i32) -> (i32, i32) {
    %c0_i32 = arith.constant 0 : i32
    %c0_i32_0 = arith.constant 0 : i32
    return %arg0, %c0_i32 : i32, i32
  }
  func.func @transform_1(%arg0: i32, %arg1: i32) -> (i32, i32) {
    %c0_i32 = arith.constant 0 : i32
    %c0_i32_0 = arith.constant 0 : i32
    return %c0_i32, %arg1 : i32, i32
  }
  func.func @transform_2(%arg0: i32, %arg1: i32) -> (i32, i32) {
    %c0_i32 = arith.constant 0 : i32
    %c0_i32_0 = arith.constant 0 : i32
    return %c0_i32, %arg1 : i32, i32
  }
  func.func @transform_3(%arg0: i32, %arg1: i32) -> (i32, i32) {
    %c0_i32 = arith.constant 0 : i32
    %c0_i32_0 = arith.constant 0 : i32
    return %arg1, %c0_i32 : i32, i32
  }
  func.func @transform_4(%arg0: i32, %arg1: i32) -> (i32, i32) {
    %c0_i32 = arith.constant 0 : i32
    %c0_i32_0 = arith.constant 0 : i32
    %c0_i32_1 = arith.constant 0 : i32
    return %c0_i32, %c0_i32_0 : i32, i32
  }
  func.func @transform_5(%arg0: i32, %arg1: i32) -> (i32, i32) {
    %c0_i32 = arith.constant 0 : i32
    %c0_i32_0 = arith.constant 0 : i32
    return %arg0, %c0_i32 : i32, i32
  }
}

module attributes {stable_mosaic.version = 11 : i64} {
  func.func @_swiglu_kernel_resident(%arg0: i32, %arg1: i32, %arg2: memref<16x32xbf16, #tpu.memory_space<vmem>>, %arg3: memref<32x128xbf16, #tpu.memory_space<vmem>>, %arg4: memref<1x128xf32, #tpu.memory_space<vmem>>, %arg5: memref<64x32xbf16, #tpu.memory_space<vmem>>, %arg6: memref<1x32xf32, #tpu.memory_space<vmem>>, %arg7: memref<16x32xf32, #tpu.memory_space<vmem>>) attributes {dimension_semantics = [#tpu.dimension_semantics<parallel>, #tpu.dimension_semantics<arbitrary>], iteration_bounds = array<i64: 1, 1>, scalar_prefetch = 0 : i64, scratch_operands = 0 : i64, tpu.core_type = #tpu.core_type<tc>, window_params = [{transform_indices = @transform_0, window_bounds = array<i64: 16, 32>}, {transform_indices = @transform_1, window_bounds = array<i64: 32, 128>}, {transform_indices = @transform_2, window_bounds = array<i64: 1, 128>}, {transform_indices = @transform_3, window_bounds = array<i64: 64, 32>}, {pipeline_mode = #tpu.pipeline_mode<synchronous>, transform_indices = @transform_4, window_bounds = array<i64: 1, 32>}, {transform_indices = @transform_5, window_bounds = array<i64: 16, 32>}]} {
    %c0 = arith.constant 0 : index
    %c0_0 = arith.constant 0 : index
    %0 = vector.load %arg2[%c0, %c0_0] : memref<16x32xbf16, #tpu.memory_space<vmem>>, vector<16x32xbf16>
    %c0_1 = arith.constant 0 : index
    %c0_2 = arith.constant 0 : index
    %1 = vector.load %arg3[%c0_1, %c0_2] : memref<32x128xbf16, #tpu.memory_space<vmem>>, vector<32x128xbf16>
    %cst = arith.constant dense<0.000000e+00> : vector<16x128xf32>
    %2 = tpu.matmul %0, %1, %cst {dimension_numbers = #tpu.dot_dimension_numbers<[1], [0], [0], [1], [0, 0, 1, 1], [], []>} : vector<16x32xbf16>, vector<32x128xbf16>, vector<16x128xf32> -> vector<16x128xf32>
    %c0_3 = arith.constant 0 : index
    %c0_4 = arith.constant 0 : index
    %3 = vector.load %arg4[%c0_3, %c0_4] : memref<1x128xf32, #tpu.memory_space<vmem>>, vector<1x128xf32>
    %4 = vector.broadcast %3 : vector<1x128xf32> to vector<16x128xf32>
    %5 = arith.addf %2, %4 : vector<16x128xf32>
    %6 = vector.extract_strided_slice %5 {offsets = [0, 0], sizes = [16, 64], strides = [1, 1]} : vector<16x128xf32> to vector<16x64xf32>
    %7 = vector.extract_strided_slice %5 {offsets = [0, 64], sizes = [16, 64], strides = [1, 1]} : vector<16x128xf32> to vector<16x64xf32>
    %8 = arith.negf %6 : vector<16x64xf32>
    %9 = math.exp %8 : vector<16x64xf32>
    %cst_5 = arith.constant 1.000000e+00 : f32
    %10 = vector.broadcast %cst_5 : f32 to vector<16x64xf32>
    %11 = arith.addf %10, %9 : vector<16x64xf32>
    %12 = arith.divf %10, %11 : vector<16x64xf32>
    %13 = arith.mulf %6, %12 : vector<16x64xf32>
    %14 = arith.mulf %13, %7 : vector<16x64xf32>
    %15 = arith.truncf %14 : vector<16x64xf32> to vector<16x64xbf16>
    %c0_6 = arith.constant 0 : index
    %c0_7 = arith.constant 0 : index
    %16 = vector.load %arg5[%c0_6, %c0_7] : memref<64x32xbf16, #tpu.memory_space<vmem>>, vector<64x32xbf16>
    %cst_8 = arith.constant dense<0.000000e+00> : vector<16x32xf32>
    %17 = tpu.matmul %15, %16, %cst_8 {dimension_numbers = #tpu.dot_dimension_numbers<[1], [0], [0], [1], [0, 0, 1, 1], [], []>} : vector<16x64xbf16>, vector<64x32xbf16>, vector<16x32xf32> -> vector<16x32xf32>
    %c0_9 = arith.constant 0 : index
    %c0_10 = arith.constant 0 : index
    %18 = vector.load %arg6[%c0_9, %c0_10] : memref<1x32xf32, #tpu.memory_space<vmem>>, vector<1x32xf32>
    %19 = vector.broadcast %18 : vector<1x32xf32> to vector<16x32xf32>
    %20 = arith.addf %17, %19 : vector<16x32xf32>
    %c0_11 = arith.constant 0 : index
    %c0_12 = arith.constant 0 : index
    %21 = vector.load %arg7[%c0_11, %c0_12] : memref<16x32xf32, #tpu.memory_space<vmem>>, vector<16x32xf32>
    tpu.vector_store %arg7[%c0_11, %c0_12], %20 {strides = array<i32>} : memref<16x32xf32, #tpu.memory_space<vmem>>, vector<16x32xf32>,
    return
  }
  func.func @transform_0(%arg0: i32, %arg1: i32) -> (i32, i32) {
    %c0_i32 = arith.constant 0 : i32
    %c0_i32_0 = arith.constant 0 : i32
    return %arg0, %c0_i32 : i32, i32
  }
  func.func @transform_1(%arg0: i32, %arg1: i32) -> (i32, i32) {
    %c0_i32 = arith.constant 0 : i32
    %c0_i32_0 = arith.constant 0 : i32
    return %c0_i32, %arg1 : i32, i32
  }
  func.func @transform_2(%arg0: i32, %arg1: i32) -> (i32, i32) {
    %c0_i32 = arith.constant 0 : i32
    %c0_i32_0 = arith.constant 0 : i32
    return %c0_i32, %arg1 : i32, i32
  }
  func.func @transform_3(%arg0: i32, %arg1: i32) -> (i32, i32) {
    %c0_i32 = arith.constant 0 : i32
    %c0_i32_0 = arith.constant 0 : i32
    return %arg1, %c0_i32 : i32, i32
  }
  func.func @transform_4(%arg0: i32, %arg1: i32) -> (i32, i32) {
    %c0_i32 = arith.constant 0 : i32
    %c0_i32_0 = arith.constant 0 : i32
    %c0_i32_1 = arith.constant 0 : i32
    return %c0_i32, %c0_i32_0 : i32, i32
  }
  func.func @transform_5(%arg0: i32, %arg1: i32) -> (i32, i32) {
    %c0_i32 = arith.constant 0 : i32
    %c0_i32_0 = arith.constant 0 : i32
    return %arg0, %c0_i32 : i32, i32
  }
}

</mosaic_0001>

<bundles_post_ra>
// kernel: _swiglu_forward.1
= control target key start
LH: loop header
LB: loop body
LE: loop exit
PB: predicated region body
PF: predicated region fallthrough
CT: control target
= control target key end

     0   :  { %10 = vsyncpa [#allocation3], 0  ;;  %s634_s0 = inlined_call_operand.hbm [shape: bf16[16,32], index: 0, kind: input, shape index: {}]   ;;  %s635_s1 = inlined_call_operand.hbm [shape: bf16[32,128], index: 1, kind: input, shape index: {}]   ;;  %s636_s2 = inlined_call_operand.hbm [shape: f32[1,128], index: 2, kind: input, shape index: {}]   ;;  %s637_s3 = inlined_call_operand.hbm [shape: bf16[64,32], index: 3, kind: input, shape index: {}]   ;;  %s638_s4 = inlined_call_operand.hbm [shape: f32[1,32], index: 4, kind: input, shape index: {}]   ;;  %s639_s5 = inlined_call_operand.hbm [shape: f32[16,32], index: 5, kind: output, shape index: {}]  }
   0x1   :  { %11 = vsyncpa [#allocation6], 0 }
   0x2   :  { %12 = vsyncpa [#allocation9], 0 }
   0x3   :  { %13 = vsyncpa [#allocation4], 0  ;;  %s499_s18 = smov [#allocation5]   ;;  %s500_s20 = smov [#allocation8]  }
   0x4   :  { %s31_s19 = sshll.u32 %s499_s18, 4  ;;  %s53_s21 = sshll.u32 %s500_s20, 4  ;;  %s32_s19 = int_to_ptr.vmem [resolvable:$true] %s31_s19  ;;  %s541_s21 = int_to_ptr.vmem [resolvable:$true] %s53_s21 }
   0x5   :  { %s359_s24 = scalar_lea.hbm %s635_s1, 256 }
   0x6   :  { %p360_p0 = scmp.ne.s32.totalorder %s635_s1, %s359_s24  ;;  %p363_p1 = scmp.lt.u32.totalorder %s359_s24, %s635_s1 }
   0x8   :  { %p365_p2 = pnand %p363_p1, %p360_p0 }
   0xa   :  { %368 = shalt.err (!%p365_p2)
}
   0xb   :  { %s369_s29 = scalar_lea.vmem %s32_s19, 256  ;;  %p374_p4 = scmp.lt.s32.totalorder %s32_s19, %s32_s19 }
   0xc   :  { %p370_p3 = scmp.ne.s32.totalorder %s32_s19, %s369_s29  ;;  %p375_p5 = scmp.lt.s32.totalorder %s369_s29, %s369_s29 }
   0xe   :  { %p376_p6 = por %p375_p5, %p374_p4 }
  0x10   :  { %p377_p7 = pnand %p376_p6, %p370_p3 }
  0x12   :  { %380 = shalt.err (!%p377_p7)
}
  0x13   :  { %s501_s30 = smov 64   ;;  %s502_s6 = smov 4  }
  0x14   :  { %37 = dma.hbm_to_vmem [thread:$0]  %s635_s1, 256, %s32_s19, [#allocation6], %s501_s30, %s501_s30, %s502_s6  }
  0x15   :  { %s381_s11 = scalar_lea.hbm %s637_s3, 512 }
  0x16   :  { %p382_p8 = scmp.ne.s32.totalorder %s637_s3, %s381_s11  ;;  %p385_p9 = scmp.lt.u32.totalorder %s381_s11, %s637_s3 }
  0x18   :  { %p387_p10 = pnand %p385_p9, %p382_p8 }
  0x1a   :  { %390 = shalt.err (!%p387_p10)
}
  0x1b   :  { %s391_s16 = scalar_lea.vmem %s541_s21, 512  ;;  %p396_p12 = scmp.lt.s32.totalorder %s541_s21, %s541_s21 }
  0x1c   :  { %p392_p11 = scmp.ne.s32.totalorder %s541_s21, %s391_s16  ;;  %p397_p13 = scmp.lt.s32.totalorder %s391_s16, %s391_s16 }
  0x1e   :  { %p398_p0 = por %p397_p13, %p396_p12 }
  0x20   :  { %p399_p1 = pnand %p398_p0, %p392_p11 }
  0x22   :  { %402 = shalt.err (!%p399_p1)
}
  0x23   :  { %59 = dma.hbm_to_vmem [thread:$0]  %s637_s3, 512, %s541_s21, [#allocation9], %s501_s30, %s501_s30, %s502_s6  }
  0x24   :  { %s503_s18 = smov [#allocation2]   ;;  %s504_s20 = smov [#allocation7]  }
  0x25   :  { %s19_s19 = sshll.u32 %s503_s18, 4  ;;  %s44_s22 = sshll.u32 %s504_s20, 4  ;;  %s20_s19 = int_to_ptr.vmem [resolvable:$true] %s19_s19  ;;  %s45_s22 = int_to_ptr.vmem [resolvable:$true] %s44_s22 }
  0x26   :  { %s403_s25 = scalar_lea.hbm %s634_s0, 128 }
  0x27   :  { %p404_p2 = scmp.ne.s32.totalorder %s634_s0, %s403_s25  ;;  %p407_p3 = scmp.lt.u32.totalorder %s403_s25, %s634_s0 }
  0x29   :  { %p409_p4 = pnand %p407_p3, %p404_p2 }
  0x2b   :  { %412 = shalt.err (!%p409_p4)
}
  0x2c   :  { %s413_s3 = scalar_lea.vmem %s20_s19, 128  ;;  %p418_p6 = scmp.lt.s32.totalorder %s20_s19, %s20_s19 }
  0x2d   :  { %p414_p5 = scmp.ne.s32.totalorder %s20_s19, %s413_s3  ;;  %p419_p7 = scmp.lt.s32.totalorder %s413_s3, %s413_s3 }
  0x2f   :  { %p420_p8 = por %p419_p7, %p418_p6 }
  0x31   :  { %p421_p9 = pnand %p420_p8, %p414_p5 }
  0x33   :  { %424 = shalt.err (!%p421_p9)
}
  0x34   :  { %25 = dma.hbm_to_vmem [thread:$0]  %s634_s0, 128, %s20_s19, [#allocation3], %s501_s30, %s501_s30, %s502_s6  }
  0x35   :  { %s425_s10 = scalar_lea.hbm %s636_s2, 16 }
  0x36   :  { %p426_p10 = scmp.ne.s32.totalorder %s636_s2, %s425_s10  ;;  %p429_p11 = scmp.lt.u32.totalorder %s425_s10, %s636_s2 }
  0x38   :  { %p431_p12 = pnand %p429_p11, %p426_p10 }
  0x3a   :  { %434 = shalt.err (!%p431_p12)
}
  0x3b   :  { %s435_s15 = scalar_lea.vmem %s45_s22, 16  ;;  %s439_s16 = scalar_lea.vmem %s45_s22, 32 }
  0x3c   :  { %p436_p13 = scmp.ne.s32.totalorder %s45_s22, %s435_s15  ;;  %p440_p0 = scmp.lt.s32.totalorder %s45_s22, %s45_s22 }
  0x3d   :  { %p441_p1 = scmp.lt.s32.totalorder %s439_s16, %s435_s15 }
  0x3f   :  { %p442_p2 = por %p441_p1, %p440_p0 }
  0x41   :  { %p443_p3 = pnand %p442_p2, %p436_p13 }
  0x43   :  { %446 = shalt.err (!%p443_p3)
}
  0x44   :  { %47 = dma.hbm_to_vmem [thread:$0]  %s636_s2, 16, %s45_s22, [#allocation6]  }
  0x45   :  { %s505_s1 = smov [#allocation10]   ;;  %s447_s20 = scalar_lea.hbm %s638_s4, 16 }
  0x46   :  { %s66_s17 = sshll.u32 %s505_s1, 4  ;;  %p448_p4 = scmp.ne.s32.totalorder %s638_s4, %s447_s20  ;;  %s67_s17 = int_to_ptr.vmem [resolvable:$true] %s66_s17 }
  0x47   :  { %p451_p5 = scmp.lt.u32.totalorder %s447_s20, %s638_s4 }
  0x49   :  { %p453_p6 = pnand %p451_p5, %p448_p4 }
  0x4b   :  { %456 = shalt.err (!%p453_p6)
}
  0x4c   :  { %s457_s27 = scalar_lea.vmem %s67_s17, 16  ;;  %s461_s2 = scalar_lea.vmem %s67_s17, 32 }
  0x4d   :  { %p458_p7 = scmp.ne.s32.totalorder %s67_s17, %s457_s27  ;;  %p462_p8 = scmp.lt.s32.totalorder %s67_s17, %s67_s17 }
  0x4e   :  { %p463_p9 = scmp.lt.s32.totalorder %s461_s2, %s457_s27 }
  0x50   :  { %p464_p10 = por %p463_p9, %p462_p8 }
  0x52   :  { %p465_p11 = pnand %p464_p10, %p458_p7 }
  0x54   :  { %468 = shalt.err (!%p465_p11)
}
  0x55   :  { %69 = dma.hbm_to_vmem [thread:$0]  %s638_s4, 16, %s67_s17, [#allocation9]  }
  0x56   :  { %491 = dma.done.wait [#allocation3], 128  }
  0x57   :  { %492 = vsyncadd [#allocation3], 4294967168 }
  0x58   :  { %493 = dma.done.wait [#allocation6], 272  }
  0x59   :  { %494 = vsyncadd [#allocation6], 4294967024 }
  0x5a   :  { %495 = dma.done.wait [#allocation9], 528  }
  0x5b   :  { %496 = vsyncadd [#allocation9], 4294966768  ;;  %v506_v0 = vmov 0.0   ;;  %vm507_vm0 = vmmov 0   ;;  %v344_v1 = vld [vmem:[#allocation5] sm:$0xff]   ;;  %v345_v2 = vld [vmem:[#allocation5 + $0x8] sm:$0xff]  }
  0x5c   :  { %312 = vmatprep.subr.bf16.mxu0 %v506_v0  ;;  %316 = vmatprep.mubr.msk.bf16.mxu0 %vm507_vm0, %v506_v0  ;;  %v346_v3 = vld [vmem:[#allocation2] sm:$0xff]   ;;  %vm116_vm1 = vcmask 261120   ;;  %v349_v6 = vld [vmem:[#allocation8 + $0x10] sm:$0xff]   ;;  %v350_v7 = vld [vmem:[#allocation8 + $0x18] sm:$0xff]   ;;  %vm225_vm2 = vcmask 523264   ;;  %s508_s4 = smov [#allocation11]  }
  0x5d   :  { %320 = vmatprep.subr.bf16.mxu1 %v506_v0  ;;  %328 = vmatprep.mubr.msk.bf16.mxu1 %vm507_vm0, %v506_v0  ;;  %v347_v4 = vld [vmem:[#allocation8] sm:$0xff]   ;;  %v348_v5 = vld [vmem:[#allocation8 + $0x8] sm:$0xff]   ;;  %v291_v8 = vld [vmem:[#allocation7] ss:$0 sm:$0xff] }
  0x5e   :  { %313 = vmatpush3.bf16.msra.mxu0 %v344_v1  ;;  %321 = vmatpush3.bf16.msra.mxu1 %v347_v4  ;;  %v298_v30 = vld [vmem:[#allocation10] ss:$0 sm:$0xff] }
  0x5f   :  { %314 = vmatprep.subr.bf16.mxu0 %v506_v0  ;;  %322 = vmatprep.subr.bf16.mxu1 %v506_v0 }
  0x62   :  { %315 = vmatpush3.bf16.msra.mxu0 %v345_v2  ;;  %323 = vmatpush3.bf16.msra.mxu1 %v348_v5 }
  0x63   :  { %324 = vmatprep.subr.bf16.mxu1 %v506_v0 }
  0x65   :  { %317 = vmatmul.mubr.msk.bf16.vlgmr.msra.gmra.mrb[0].mxu0 %vm116_vm1, %v346_v3 }
  0x66   :  { %325 = vmatpush3.bf16.msra.mxu1 %v349_v6 }
  0x67   :  { %326 = vmatprep.subr.bf16.mxu1 %v506_v0 }
  0x6a   :  { %327 = vmatpush3.bf16.msra.mxu1 %v350_v7 }
 0x138   :  { %v154_v9 = vpop.f32.mrb[0].mxu0 }
 0x139   :  { %v155_v10 = vadd.f32 %v291_v8, %v154_v9  ;;  %v318_v11 = vpop.f32.mrb[1].mxu0 }
 0x13a   :  { %v157_v12 = vpop.f32.mrb[2].mxu0 }
 0x13b   :  { %177 = vrot.lane.b32.xlu0 %v155_v10, %s501_s30  ;;  %v319_v13 = vpop.f32.mrb[3].mxu0  ;;  %v158_v14 = vadd.f32 %v291_v8, %v157_v12  ;;  %v296_v15 = vmul.f32 -1.442695, %v155_v10 }
 0x13d   :  { %v297_v16 = vmul.f32 -1.442695, %v158_v14  ;;  %351 = vpow2.f32 %v296_v15 }
 0x13f   :  { %179 = vrot.lane.b32.xlu0 %v158_v14, %s501_s30  ;;  %353 = vpow2.f32 %v297_v16  ;;  %s277_s30 = sshll.u32 %s508_s4, 4  ;;  %s278_s30 = int_to_ptr.vmem [resolvable:$true] %s277_s30 }
 0x140   :  { %s469_s29 = scalar_lea.vmem %s278_s30, 256  ;;  %p474_p13 = scmp.lt.s32.totalorder %s278_s30, %s278_s30 }
 0x141   :  { %p470_p12 = scmp.ne.s32.totalorder %s278_s30, %s469_s29  ;;  %p475_p0 = scmp.lt.s32.totalorder %s469_s29, %s469_s29 }
 0x143   :  { %p476_p1 = por %p475_p0, %p474_p13 }
 0x145   :  { %p477_p2 = pnand %p476_p1, %p470_p12 }
 0x147   :  { %v352_v17 = vpop.eup %351 }
 0x148   :  { %v167_v19 = vadd.f32 1.0, %v352_v17 }
 0x149   :  { %v354_v18 = vpop.eup %353 }
 0x14a   :  { %v168_v20 = vadd.f32 1.0, %v354_v18  ;;  %355 = vrcp.f32 %v167_v19 }
 0x14c   :  { %357 = vrcp.f32 %v168_v20 }
 0x154   :  { %v356_v21 = vpop.eup %355 }
 0x155   :  { %v173_v24 = vmul.f32 %v356_v21, %v155_v10 }
 0x156   :  { %v358_v22 = vpop.eup %357 }
 0x157   :  { %v174_v25 = vmul.f32 %v358_v22, %v158_v14 }
 0x1ad   :  { %v178_v23 = vpop.permute.xlu0 %177 }
 0x1ae   :  { %v183_v27 = vmul.f32 %v178_v23, %v173_v24 }
 0x1b1   :  { %v180_v26 = vpop.permute.xlu0 %179 }
 0x1b2   :  { %v184_v28 = vmul.f32 %v180_v26, %v174_v25 }
 0x1b4   :  { %v185_v29 = vpack.c.bf16 %v184_v28, %v183_v27 }
 0x1b6   :  { %329 = vmatmul.mubr.msk.bf16.vlgmr.msra.gmra.mrb[0].mxu1 %vm225_vm2, %v185_v29 }
 0x289   :  { %v263_v31 = vpop.f32.mrb[0].mxu1 }
 0x28a   :  { %v264_v32 = vadd.f32 %v298_v30, %v263_v31  ;;  %v330_v33 = vpop.f32.mrb[1].mxu1 }
 0x28b   :  { %v266_v34 = vpop.f32.mrb[2].mxu1 }
 0x28c   :  { %270 = vst.msk [vmem:[#allocation11] sm:$0xff] %vm116_vm1, %v264_v32  ;;  %v267_v35 = vadd.f32 %v298_v30, %v266_v34  ;;  %v331_v36 = vpop.f32.mrb[3].mxu1 }
 0x28e   :  { %271 = vst.msk [vmem:[#allocation11 + $0x8] sm:$0xff] %vm116_vm1, %v267_v35 }
 0x28f   :  { %480 = shalt.err (!%p477_p2)
}
 0x290   :  { %s481_s7 = scalar_lea.hbm %s639_s5, 256 }
 0x291   :  { %p482_p3 = scmp.ne.s32.totalorder %s639_s5, %s481_s7  ;;  %p485_p4 = scmp.lt.u32.totalorder %s481_s7, %s639_s5 }
 0x293   :  { %p487_p5 = pnand %p485_p4, %p482_p3 }
 0x295   :  { %490 = shalt.err (!%p487_p5)
}
 0x296   :  { %s509_s12 = smov 128   ;;  %s510_s13 = smov 8  }
 0x297   :  { %283 = dma.vmem_to_hbm [thread:$0]  %s278_s30, 256, %s639_s5, [#allocation4], %s509_s12, %s509_s12, %s510_s13  }
 0x298   :  { %497 = dma.done.wait [#allocation4], 256  }
 0x299   :  { %498 = vsyncadd [#allocation4], 4294967040 }
 0x29a   :  { %287 = vsyncpa [#allocation3], 1 }
 0x29b   :  { %288 = vsyncpa [#allocation6], 1 }
 0x29c   :  { %289 = vsyncpa [#allocation9], 1 }
 0x29d   :  { %290 = vsyncpa [#allocation4], 1 }

// kernel: _swiglu_forward.1
= control target key start
LH: loop header
LB: loop body
LE: loop exit
PB: predicated region body
PF: predicated region fallthrough
CT: control target
= control target key end

     0   :  { %10 = vsyncpa [#allocation3], 0  ;;  %s634_s0 = inlined_call_operand.hbm [shape: bf16[16,32], index: 0, kind: input, shape index: {}]   ;;  %s635_s1 = inlined_call_operand.hbm [shape: bf16[32,128], index: 1, kind: input, shape index: {}]   ;;  %s636_s2 = inlined_call_operand.hbm [shape: f32[1,128], index: 2, kind: input, shape index: {}]   ;;  %s637_s3 = inlined_call_operand.hbm [shape: bf16[64,32], index: 3, kind: input, shape index: {}]   ;;  %s638_s4 = inlined_call_operand.hbm [shape: f32[1,32], index: 4, kind: input, shape index: {}]   ;;  %s639_s5 = inlined_call_operand.hbm [shape: f32[16,32], index: 5, kind: output, shape index: {}]  }
   0x1   :  { %11 = vsyncpa [#allocation6], 0 }
   0x2   :  { %12 = vsyncpa [#allocation9], 0 }
   0x3   :  { %13 = vsyncpa [#allocation4], 0  ;;  %s499_s18 = smov [#allocation5]   ;;  %s500_s20 = smov [#allocation8]  }
   0x4   :  { %s31_s19 = sshll.u32 %s499_s18, 4  ;;  %s53_s21 = sshll.u32 %s500_s20, 4  ;;  %s32_s19 = int_to_ptr.vmem [resolvable:$true] %s31_s19  ;;  %s541_s21 = int_to_ptr.vmem [resolvable:$true] %s53_s21 }
   0x5   :  { %s359_s24 = scalar_lea.hbm %s635_s1, 256 }
   0x6   :  { %p360_p0 = scmp.ne.s32.totalorder %s635_s1, %s359_s24  ;;  %p363_p1 = scmp.lt.u32.totalorder %s359_s24, %s635_s1 }
   0x8   :  { %p365_p2 = pnand %p363_p1, %p360_p0 }
   0xa   :  { %368 = shalt.err (!%p365_p2)
}
   0xb   :  { %s369_s29 = scalar_lea.vmem %s32_s19, 256  ;;  %p374_p4 = scmp.lt.s32.totalorder %s32_s19, %s32_s19 }
   0xc   :  { %p370_p3 = scmp.ne.s32.totalorder %s32_s19, %s369_s29  ;;  %p375_p5 = scmp.lt.s32.totalorder %s369_s29, %s369_s29 }
   0xe   :  { %p376_p6 = por %p375_p5, %p374_p4 }
  0x10   :  { %p377_p7 = pnand %p376_p6, %p370_p3 }
  0x12   :  { %380 = shalt.err (!%p377_p7)
}
  0x13   :  { %s501_s30 = smov 64   ;;  %s502_s6 = smov 4  }
  0x14   :  { %37 = dma.hbm_to_vmem [thread:$0]  %s635_s1, 256, %s32_s19, [#allocation6], %s501_s30, %s501_s30, %s502_s6  }
  0x15   :  { %s381_s11 = scalar_lea.hbm %s637_s3, 512 }
  0x16   :  { %p382_p8 = scmp.ne.s32.totalorder %s637_s3, %s381_s11  ;;  %p385_p9 = scmp.lt.u32.totalorder %s381_s11, %s637_s3 }
  0x18   :  { %p387_p10 = pnand %p385_p9, %p382_p8 }
  0x1a   :  { %390 = shalt.err (!%p387_p10)
}
  0x1b   :  { %s391_s16 = scalar_lea.vmem %s541_s21, 512  ;;  %p396_p12 = scmp.lt.s32.totalorder %s541_s21, %s541_s21 }
  0x1c   :  { %p392_p11 = scmp.ne.s32.totalorder %s541_s21, %s391_s16  ;;  %p397_p13 = scmp.lt.s32.totalorder %s391_s16, %s391_s16 }
  0x1e   :  { %p398_p0 = por %p397_p13, %p396_p12 }
  0x20   :  { %p399_p1 = pnand %p398_p0, %p392_p11 }
  0x22   :  { %402 = shalt.err (!%p399_p1)
}
  0x23   :  { %59 = dma.hbm_to_vmem [thread:$0]  %s637_s3, 512, %s541_s21, [#allocation9], %s501_s30, %s501_s30, %s502_s6  }
  0x24   :  { %s503_s18 = smov [#allocation2]   ;;  %s504_s20 = smov [#allocation7]  }
  0x25   :  { %s19_s19 = sshll.u32 %s503_s18, 4  ;;  %s44_s22 = sshll.u32 %s504_s20, 4  ;;  %s20_s19 = int_to_ptr.vmem [resolvable:$true] %s19_s19  ;;  %s45_s22 = int_to_ptr.vmem [resolvable:$true] %s44_s22 }
  0x26   :  { %s403_s25 = scalar_lea.hbm %s634_s0, 128 }
  0x27   :  { %p404_p2 = scmp.ne.s32.totalorder %s634_s0, %s403_s25  ;;  %p407_p3 = scmp.lt.u32.totalorder %s403_s25, %s634_s0 }
  0x29   :  { %p409_p4 = pnand %p407_p3, %p404_p2 }
  0x2b   :  { %412 = shalt.err (!%p409_p4)
}
  0x2c   :  { %s413_s3 = scalar_lea.vmem %s20_s19, 128  ;;  %p418_p6 = scmp.lt.s32.totalorder %s20_s19, %s20_s19 }
  0x2d   :  { %p414_p5 = scmp.ne.s32.totalorder %s20_s19, %s413_s3  ;;  %p419_p7 = scmp.lt.s32.totalorder %s413_s3, %s413_s3 }
  0x2f   :  { %p420_p8 = por %p419_p7, %p418_p6 }
  0x31   :  { %p421_p9 = pnand %p420_p8, %p414_p5 }
  0x33   :  { %424 = shalt.err (!%p421_p9)
}
  0x34   :  { %25 = dma.hbm_to_vmem [thread:$0]  %s634_s0, 128, %s20_s19, [#allocation3], %s501_s30, %s501_s30, %s502_s6  }
  0x35   :  { %s425_s10 = scalar_lea.hbm %s636_s2, 16 }
  0x36   :  { %p426_p10 = scmp.ne.s32.totalorder %s636_s2, %s425_s10  ;;  %p429_p11 = scmp.lt.u32.totalorder %s425_s10, %s636_s2 }
  0x38   :  { %p431_p12 = pnand %p429_p11, %p426_p10 }
  0x3a   :  { %434 = shalt.err (!%p431_p12)
}
  0x3b   :  { %s435_s15 = scalar_lea.vmem %s45_s22, 16  ;;  %s439_s16 = scalar_lea.vmem %s45_s22, 32 }
  0x3c   :  { %p436_p13 = scmp.ne.s32.totalorder %s45_s22, %s435_s15  ;;  %p440_p0 = scmp.lt.s32.totalorder %s45_s22, %s45_s22 }
  0x3d   :  { %p441_p1 = scmp.lt.s32.totalorder %s439_s16, %s435_s15 }
  0x3f   :  { %p442_p2 = por %p441_p1, %p440_p0 }
  0x41   :  { %p443_p3 = pnand %p442_p2, %p436_p13 }
  0x43   :  { %446 = shalt.err (!%p443_p3)
}
  0x44   :  { %47 = dma.hbm_to_vmem [thread:$0]  %s636_s2, 16, %s45_s22, [#allocation6]  }
  0x45   :  { %s505_s1 = smov [#allocation10]   ;;  %s447_s20 = scalar_lea.hbm %s638_s4, 16 }
  0x46   :  { %s66_s17 = sshll.u32 %s505_s1, 4  ;;  %p448_p4 = scmp.ne.s32.totalorder %s638_s4, %s447_s20  ;;  %s67_s17 = int_to_ptr.vmem [resolvable:$true] %s66_s17 }
  0x47   :  { %p451_p5 = scmp.lt.u32.totalorder %s447_s20, %s638_s4 }
  0x49   :  { %p453_p6 = pnand %p451_p5, %p448_p4 }
  0x4b   :  { %456 = shalt.err (!%p453_p6)
}
  0x4c   :  { %s457_s27 = scalar_lea.vmem %s67_s17, 16  ;;  %s461_s2 = scalar_lea.vmem %s67_s17, 32 }
  0x4d   :  { %p458_p7 = scmp.ne.s32.totalorder %s67_s17, %s457_s27  ;;  %p462_p8 = scmp.lt.s32.totalorder %s67_s17, %s67_s17 }
  0x4e   :  { %p463_p9 = scmp.lt.s32.totalorder %s461_s2, %s457_s27 }
  0x50   :  { %p464_p10 = por %p463_p9, %p462_p8 }
  0x52   :  { %p465_p11 = pnand %p464_p10, %p458_p7 }
  0x54   :  { %468 = shalt.err (!%p465_p11)
}
  0x55   :  { %69 = dma.hbm_to_vmem [thread:$0]  %s638_s4, 16, %s67_s17, [#allocation9]  }
  0x56   :  { %491 = dma.done.wait [#allocation3], 128  }
  0x57   :  { %492 = vsyncadd [#allocation3], 4294967168 }
  0x58   :  { %493 = dma.done.wait [#allocation6], 272  }
  0x59   :  { %494 = vsyncadd [#allocation6], 4294967024 }
  0x5a   :  { %495 = dma.done.wait [#allocation9], 528  }
  0x5b   :  { %496 = vsyncadd [#allocation9], 4294966768  ;;  %v506_v0 = vmov 0.0   ;;  %vm507_vm0 = vmmov 0   ;;  %v344_v1 = vld [vmem:[#allocation5] sm:$0xff]   ;;  %v345_v2 = vld [vmem:[#allocation5 + $0x8] sm:$0xff]  }
  0x5c   :  { %312 = vmatprep.subr.bf16.mxu0 %v506_v0  ;;  %316 = vmatprep.mubr.msk.bf16.mxu0 %vm507_vm0, %v506_v0  ;;  %v346_v3 = vld [vmem:[#allocation2] sm:$0xff]   ;;  %vm116_vm1 = vcmask 261120   ;;  %v349_v6 = vld [vmem:[#allocation8 + $0x10] sm:$0xff]   ;;  %v350_v7 = vld [vmem:[#allocation8 + $0x18] sm:$0xff]   ;;  %vm225_vm2 = vcmask 523264   ;;  %s508_s4 = smov [#allocation11]  }
  0x5d   :  { %320 = vmatprep.subr.bf16.mxu1 %v506_v0  ;;  %328 = vmatprep.mubr.msk.bf16.mxu1 %vm507_vm0, %v506_v0  ;;  %v347_v4 = vld [vmem:[#allocation8] sm:$0xff]   ;;  %v348_v5 = vld [vmem:[#allocation8 + $0x8] sm:$0xff]   ;;  %v291_v8 = vld [vmem:[#allocation7] ss:$0 sm:$0xff] }
  0x5e   :  { %313 = vmatpush3.bf16.msra.mxu0 %v344_v1  ;;  %321 = vmatpush3.bf16.msra.mxu1 %v347_v4  ;;  %v298_v30 = vld [vmem:[#allocation10] ss:$0 sm:$0xff] }
  0x5f   :  { %314 = vmatprep.subr.bf16.mxu0 %v506_v0  ;;  %322 = vmatprep.subr.bf16.mxu1 %v506_v0 }
  0x62   :  { %315 = vmatpush3.bf16.msra.mxu0 %v345_v2  ;;  %323 = vmatpush3.bf16.msra.mxu1 %v348_v5 }
  0x63   :  { %324 = vmatprep.subr.bf16.mxu1 %v506_v0 }
  0x65   :  { %317 = vmatmul.mubr.msk.bf16.vlgmr.msra.gmra.mrb[0].mxu0 %vm116_vm1, %v346_v3 }
  0x66   :  { %325 = vmatpush3.bf16.msra.mxu1 %v349_v6 }
  0x67   :  { %326 = vmatprep.subr.bf16.mxu1 %v506_v0 }
  0x6a   :  { %327 = vmatpush3.bf16.msra.mxu1 %v350_v7 }
 0x138   :  { %v154_v9 = vpop.f32.mrb[0].mxu0 }
 0x139   :  { %v155_v10 = vadd.f32 %v291_v8, %v154_v9  ;;  %v318_v11 = vpop.f32.mrb[1].mxu0 }
 0x13a   :  { %v157_v12 = vpop.f32.mrb[2].mxu0 }
 0x13b   :  { %177 = vrot.lane.b32.xlu0 %v155_v10, %s501_s30  ;;  %v319_v13 = vpop.f32.mrb[3].mxu0  ;;  %v158_v14 = vadd.f32 %v291_v8, %v157_v12  ;;  %v296_v15 = vmul.f32 -1.442695, %v155_v10 }
 0x13d   :  { %v297_v16 = vmul.f32 -1.442695, %v158_v14  ;;  %351 = vpow2.f32 %v296_v15 }
 0x13f   :  { %179 = vrot.lane.b32.xlu0 %v158_v14, %s501_s30  ;;  %353 = vpow2.f32 %v297_v16  ;;  %s277_s30 = sshll.u32 %s508_s4, 4  ;;  %s278_s30 = int_to_ptr.vmem [resolvable:$true] %s277_s30 }
 0x140   :  { %s469_s29 = scalar_lea.vmem %s278_s30, 256  ;;  %p474_p13 = scmp.lt.s32.totalorder %s278_s30, %s278_s30 }
 0x141   :  { %p470_p12 = scmp.ne.s32.totalorder %s278_s30, %s469_s29  ;;  %p475_p0 = scmp.lt.s32.totalorder %s469_s29, %s469_s29 }
 0x143   :  { %p476_p1 = por %p475_p0, %p474_p13 }
 0x145   :  { %p477_p2 = pnand %p476_p1, %p470_p12 }
 0x147   :  { %v352_v17 = vpop.eup %351 }
 0x148   :  { %v167_v19 = vadd.f32 1.0, %v352_v17 }
 0x149   :  { %v354_v18 = vpop.eup %353 }
 0x14a   :  { %v168_v20 = vadd.f32 1.0, %v354_v18  ;;  %355 = vrcp.f32 %v167_v19 }
 0x14c   :  { %357 = vrcp.f32 %v168_v20 }
 0x154   :  { %v356_v21 = vpop.eup %355 }
 0x155   :  { %v173_v24 = vmul.f32 %v356_v21, %v155_v10 }
 0x156   :  { %v358_v22 = vpop.eup %357 }
 0x157   :  { %v174_v25 = vmul.f32 %v358_v22, %v158_v14 }
 0x1ad   :  { %v178_v23 = vpop.permute.xlu0 %177 }
 0x1ae   :  { %v183_v27 = vmul.f32 %v178_v23, %v173_v24 }
 0x1b1   :  { %v180_v26 = vpop.permute.xlu0 %179 }
 0x1b2   :  { %v184_v28 = vmul.f32 %v180_v26, %v174_v25 }
 0x1b4   :  { %v185_v29 = vpack.c.bf16 %v184_v28, %v183_v27 }
 0x1b6   :  { %329 = vmatmul.mubr.msk.bf16.vlgmr.msra.gmra.mrb[0].mxu1 %vm225_vm2, %v185_v29 }
 0x289   :  { %v263_v31 = vpop.f32.mrb[0].mxu1 }
 0x28a   :  { %v264_v32 = vadd.f32 %v298_v30, %v263_v31  ;;  %v330_v33 = vpop.f32.mrb[1].mxu1 }
 0x28b   :  { %v266_v34 = vpop.f32.mrb[2].mxu1 }
 0x28c   :  { %270 = vst.msk [vmem:[#allocation11] sm:$0xff] %vm116_vm1, %v264_v32  ;;  %v267_v35 = vadd.f32 %v298_v30, %v266_v34  ;;  %v331_v36 = vpop.f32.mrb[3].mxu1 }
 0x28e   :  { %271 = vst.msk [vmem:[#allocation11 + $0x8] sm:$0xff] %vm116_vm1, %v267_v35 }
 0x28f   :  { %480 = shalt.err (!%p477_p2)
}
 0x290   :  { %s481_s7 = scalar_lea.hbm %s639_s5, 256 }
 0x291   :  { %p482_p3 = scmp.ne.s32.totalorder %s639_s5, %s481_s7  ;;  %p485_p4 = scmp.lt.u32.totalorder %s481_s7, %s639_s5 }
 0x293   :  { %p487_p5 = pnand %p485_p4, %p482_p3 }
 0x295   :  { %490 = shalt.err (!%p487_p5)
}
 0x296   :  { %s509_s12 = smov 128   ;;  %s510_s13 = smov 8  }
 0x297   :  { %283 = dma.vmem_to_hbm [thread:$0]  %s278_s30, 256, %s639_s5, [#allocation4], %s509_s12, %s509_s12, %s510_s13  }
 0x298   :  { %497 = dma.done.wait [#allocation4], 256  }
 0x299   :  { %498 = vsyncadd [#allocation4], 4294967040 }
 0x29a   :  { %287 = vsyncpa [#allocation3], 1 }
 0x29b   :  { %288 = vsyncpa [#allocation6], 1 }
 0x29c   :  { %289 = vsyncpa [#allocation9], 1 }
 0x29d   :  { %290 = vsyncpa [#allocation4], 1 }

</bundles_post_ra>
